<compile_context>
chip_gen: v5e
topology: v5e:2x2
jax: 0.10.0
libtpu: 0.0.40
codegen_flags: <defaults>
</compile_context>

<pallas_src>
import functools

import jax
import jax.numpy as jnp
from jax import lax
from jax.experimental import pallas as pl
from jax.experimental.pallas import tpu as pltpu


def _hardswish(x):
    return x * jnp.clip(x + 3.0, 0.0, 6.0) * (1.0 / 6.0)


def _pick_row_tile(ho, row_tile):
    if row_tile is not None and ho % row_tile == 0:
        return row_tile
    return ho


_COMPILER_PARAMS = pltpu.CompilerParams(
    dimension_semantics=("parallel", "parallel"),
    vmem_limit_bytes=32 * 1024 * 1024,
)


# ------------- kernel 1: depthwise 2x2 stride-2 conv + folded BN + Hardswish -

def _down_kernel(x_ref, w_ref, s_ref, b_ref, o_ref):
    # x_ref: (1, 4, TH, Wo, C) -- tap axis LEADING, trailing (Wo, C) lane-dense
    # w_ref: (4, C) depthwise weights, s_ref/b_ref: (1, C) folded BN
    x = x_ref[0].astype(jnp.float32)                         # (4, TH, Wo, C)
    w = w_ref[...].astype(jnp.float32)                       # (4, C)
    y = x[0] * w[0] + x[1] * w[1] + x[2] * w[2] + x[3] * w[3]  # 4 VPU FMAs
    y = y * s_ref[0] + b_ref[0]                              # folded BatchNorm
    o_ref[0] = _hardswish(y).astype(o_ref.dtype)


def depthwise_down(x_nhwc, w_dw, scale, bias, row_tile=None):
    N, H, W, C = x_nhwc.shape
    Ho, Wo = H // 2, W // 2
    TH = _pick_row_tile(Ho, row_tile)
    nR = Ho // TH
    # glue (XLA): space-to-depth with the 4 taps on a leading axis
    xs = x_nhwc.reshape(N, Ho, 2, Wo, 2, C).transpose(0, 2, 4, 1, 3, 5)
    xs = xs.reshape(N, 4, Ho, Wo, C)
    return pl.pallas_call(
        _down_kernel,
        out_shape=jax.ShapeDtypeStruct((N, Ho, Wo, C), x_nhwc.dtype),
        grid=(N, nR),
        in_specs=[
            pl.BlockSpec((1, 4, TH, Wo, C), lambda b, r: (b, 0, r, 0, 0)),
            pl.BlockSpec((4, C), lambda b, r: (0, 0)),
            pl.BlockSpec((1, C), lambda b, r: (0, 0)),
            pl.BlockSpec((1, C), lambda b, r: (0, 0)),
        ],
        out_specs=pl.BlockSpec((1, TH, Wo, C), lambda b, r: (b, r, 0, 0)),
        compiler_params=_COMPILER_PARAMS,
    )(xs, w_dw, scale.reshape(1, C), bias.reshape(1, C))


# ------------- kernel 2: 3x3 conv (s=1, p=1, dilation d) + BN + Hardswish ----

def _conv3_kernel(x_ref, w_ref, s_ref, b_ref, o_ref, *, TH, Wo, d):
    # x_ref: (1, 1, TH+2d, Wp, Cin) padded row window (incl. 2d halo rows)
    # w_ref: (9*Cin, Cout) bf16;  s_ref/b_ref: (1, Cout) folded BN (f32)
    x = x_ref[0, 0].astype(jnp.float32)                      # (TH+2d, Wp, Cin)
    cols = []
    for ky in range(3):                                      # 9 static taps
        for kx in range(3):
            patch = x[ky * d: ky * d + TH, kx * d: kx * d + Wo, :]
            cols.append(patch.reshape(TH * Wo, -1))
    # im2col: single MXU matmul with K = 9*Cin, bf16 operands, f32 accumulate
    im2col = jnp.concatenate(cols, axis=-1).astype(jnp.bfloat16)
    y = jnp.dot(im2col, w_ref[...], preferred_element_type=jnp.float32)
    y = y * s_ref[0] + b_ref[0]                              # folded BatchNorm
    y = _hardswish(y)                                        # (Dropout = id)
    o_ref[0, 0] = y.astype(o_ref.dtype)                      # 2-D store path


def conv_bn_hs(x_nhwc, w9, scale, bias, d, row_tile=None):
    N, H, W, Cin = x_nhwc.shape
    Cout = w9.shape[-1]
    p = 1
    Ho = H + 2 * p - 2 * d
    Wo = W + 2 * p - 2 * d
    TH = _pick_row_tile(Ho, row_tile)
    nR = Ho // TH
    Hw = TH + 2 * d                                          # rows incl. halo
    xp = jnp.pad(x_nhwc, ((0, 0), (p, p), (p, p), (0, 0)))   # glue: zero pad
    Wp = W + 2 * p
    # glue (XLA): overlapping row windows so Pallas blocks stay disjoint
    xw = jnp.stack([xp[:, r * TH: r * TH + Hw] for r in range(nR)], axis=1)
    # xw: (N, nR, TH+2d, Wp, Cin)
    wk = w9.reshape(9 * Cin, Cout).astype(jnp.bfloat16)      # (9*Cin, Cout)
    kernel = functools.partial(_conv3_kernel, TH=TH, Wo=Wo, d=d)
    out = pl.pallas_call(
        kernel,
        out_shape=jax.ShapeDtypeStruct((N, nR, TH * Wo, Cout), x_nhwc.dtype),
        grid=(N, nR),
        in_specs=[
            pl.BlockSpec((1, 1, Hw, Wp, Cin), lambda b, r: (b, r, 0, 0, 0)),
            pl.BlockSpec((9 * Cin, Cout), lambda b, r: (0, 0)),
            pl.BlockSpec((1, Cout), lambda b, r: (0, 0)),
            pl.BlockSpec((1, Cout), lambda b, r: (0, 0)),
        ],
        out_specs=pl.BlockSpec((1, 1, TH * Wo, Cout), lambda b, r: (b, r, 0, 0)),
        compiler_params=_COMPILER_PARAMS,
    )(xw, wk, scale.reshape(1, Cout), bias.reshape(1, Cout))
    # free row-major reshape back to NHWC (done in the wrapper, not in-kernel)
    return out.reshape(N, Ho, Wo, Cout)


# ------------------------------- _Down forward -------------------------------

def down_forward(x_nchw, params, d, row_tile=None):
    x = jnp.transpose(x_nchw, (0, 2, 3, 1))                  # NCHW -> NHWC
    x = depthwise_down(x, params["dw_w"], params["dw_scale"],
                       params["dw_bias"], row_tile)
    for (w9, s, b) in params["blocks"]:                      # rep_conv
        x = conv_bn_hs(x, w9, s, b, d, row_tile)
    return jnp.transpose(x, (0, 3, 1, 2))                    # NHWC -> NCHW


# ----------------------------- parameter setup --------------------------------

def _fold_bn(gamma, beta, mean, var, eps=1e-5):
    scale = gamma / jnp.sqrt(var + eps)
    return scale, beta - mean * scale


def _bn_params(key, c):
    kg, kb, km, kv = jax.random.split(key, 4)
    gamma = 1.0 + 0.1 * jax.random.normal(kg, (c,), jnp.float32)
    beta = 0.1 * jax.random.normal(kb, (c,), jnp.float32)
    mean = 0.1 * jax.random.normal(km, (c,), jnp.float32)
    var = 1.0 + 0.1 * jnp.abs(jax.random.normal(kv, (c,), jnp.float32))
    return _fold_bn(gamma, beta, mean, var)


def init_params(key, ci, co, n):
    ks = jax.random.split(key, 2 + n)
    # down: depthwise 2x2 conv (groups=ci) -> weight (4 taps, ci) + BN
    dw_w = 0.3 * jax.random.normal(ks[0], (4, ci), jnp.float32)
    dw_scale, dw_bias = _bn_params(ks[1], ci)
    blocks = []
    cin = ci
    for i in range(n):
        kw, kbn = jax.random.split(ks[2 + i])
        w9 = (1.0 / jnp.sqrt(9.0 * cin)) * jax.random.normal(
            kw, (9, cin, co), jnp.float32)
        s, b = _bn_params(kbn, co)
        blocks.append((w9, s, b))
        cin = co
    return {"dw_w": dw_w, "dw_scale": dw_scale, "dw_bias": dw_bias,
            "blocks": blocks}


# --------------------------- pure-JAX reference -------------------------------

def ref_forward(x_nchw, params, d, ci):
    x = jnp.transpose(x_nchw, (0, 2, 3, 1))
    w = params["dw_w"].reshape(2, 2, 1, ci)
    y = lax.conv_general_dilated(
        x, w, (2, 2), "VALID",
        dimension_numbers=("NHWC", "HWIO", "NHWC"), feature_group_count=ci)
    y = _hardswish(y * params["dw_scale"] + params["dw_bias"])
    for (w9, s, b) in params["blocks"]:
        cin, co = w9.shape[1], w9.shape[2]
        wr = w9.reshape(3, 3, cin, co)
        y = lax.conv_general_dilated(
            y, wr, (1, 1), [(1, 1), (1, 1)], rhs_dilation=(d, d),
            dimension_numbers=("NHWC", "HWIO", "NHWC"))
        y = _hardswish(y * s + b)
    return jnp.transpose(y, (0, 3, 1, 2))


if __name__ == "__main__":
    key = jax.random.PRNGKey(0)
    N, ci, co, H, W = 2, 4, 8, 16, 16
    d, n = 1, 2
    kx, kp = jax.random.split(key)
    x = jax.random.normal(kx, (N, ci, H, W), jnp.float32)
    params = init_params(kp, ci, co, n)

    # row_tile=4 exercises the multi-tile (halo) path at these toy shapes;
    # for real H pick the largest row tile that fits VMEM (e.g. 16/32).
    out = jax.block_until_ready(down_forward(x, params, d, row_tile=4))
    ref = ref_forward(x, params, d, ci)

    assert out.shape == (N, co, H // 2, W // 2), out.shape
    err = float(jnp.max(jnp.abs(out - ref)))
    scale = max(1.0, float(jnp.max(jnp.abs(ref))))
    # bf16 MXU operands (f32 accumulation) vs. f32 reference -> ~1% tolerance
    if err > 3e-2 * scale:
        raise AssertionError(f"kernel/reference mismatch: max abs err = {err}")
    print("KERNEL_OK")
</pallas_src>

<mosaic_0001>
module attributes {stable_mosaic.version = 11 : i64} {
  func.func @_down_kernel(%arg0: i32, %arg1: i32, %arg2: memref<1x4x4x8x4xf32, #tpu.memory_space<vmem>>, %arg3: memref<4x4xf32, #tpu.memory_space<vmem>>, %arg4: memref<1x4xf32, #tpu.memory_space<vmem>>, %arg5: memref<1x4xf32, #tpu.memory_space<vmem>>, %arg6: memref<1x4x8x4xf32, #tpu.memory_space<vmem>>) attributes {dimension_semantics = [#tpu.dimension_semantics<parallel>, #tpu.dimension_semantics<parallel>], iteration_bounds = array<i64: 2, 2>, scalar_prefetch = 0 : i64, scratch_operands = 0 : i64, tpu.core_type = #tpu.core_type<tc>, window_params = [{transform_indices = @transform_0, window_bounds = array<i64: 1, 4, 4, 8, 4>}, {pipeline_mode = #tpu.pipeline_mode<synchronous>, transform_indices = @transform_1, window_bounds = array<i64: 4, 4>}, {pipeline_mode = #tpu.pipeline_mode<synchronous>, transform_indices = @transform_2, window_bounds = array<i64: 1, 4>}, {pipeline_mode = #tpu.pipeline_mode<synchronous>, transform_indices = @transform_3, window_bounds = array<i64: 1, 4>}, {transform_indices = @transform_4, window_bounds = array<i64: 1, 4, 8, 4>}]} {
    %c0 = arith.constant 0 : index
    %c0_0 = arith.constant 0 : index
    %c0_1 = arith.constant 0 : index
    %c0_2 = arith.constant 0 : index
    %c0_3 = arith.constant 0 : index
    %0 = vector.load %arg2[%c0, %c0_0, %c0_1, %c0_2, %c0_3] : memref<1x4x4x8x4xf32, #tpu.memory_space<vmem>>, vector<1x4x4x8x4xf32>
    %1 = vector.shape_cast %0 : vector<1x4x4x8x4xf32> to vector<4x4x8x4xf32>
    %c0_4 = arith.constant 0 : index
    %c0_5 = arith.constant 0 : index
    %2 = vector.load %arg3[%c0_4, %c0_5] : memref<4x4xf32, #tpu.memory_space<vmem>>, vector<4x4xf32>
    %3 = vector.extract_strided_slice %1 {offsets = [0, 0, 0, 0], sizes = [1, 4, 8, 4], strides = [1, 1, 1, 1]} : vector<4x4x8x4xf32> to vector<1x4x8x4xf32>
    %4 = vector.shape_cast %3 : vector<1x4x8x4xf32> to vector<4x8x4xf32>
    %5 = vector.extract_strided_slice %2 {offsets = [0, 0], sizes = [1, 4], strides = [1, 1]} : vector<4x4xf32> to vector<1x4xf32>
    %6 = vector.shape_cast %5 : vector<1x4xf32> to vector<4xf32>
    %7 = vector.shape_cast %6 : vector<4xf32> to vector<1x1x4xf32>
    %8 = vector.broadcast %7 : vector<1x1x4xf32> to vector<4x8x4xf32>
    %9 = arith.mulf %4, %8 : vector<4x8x4xf32>
    %10 = vector.extract_strided_slice %1 {offsets = [1, 0, 0, 0], sizes = [1, 4, 8, 4], strides = [1, 1, 1, 1]} : vector<4x4x8x4xf32> to vector<1x4x8x4xf32>
    %11 = vector.shape_cast %10 : vector<1x4x8x4xf32> to vector<4x8x4xf32>
    %12 = vector.extract_strided_slice %2 {offsets = [1, 0], sizes = [1, 4], strides = [1, 1]} : vector<4x4xf32> to vector<1x4xf32>
    %13 = vector.shape_cast %12 : vector<1x4xf32> to vector<4xf32>
    %14 = vector.shape_cast %13 : vector<4xf32> to vector<1x1x4xf32>
    %15 = vector.broadcast %14 : vector<1x1x4xf32> to vector<4x8x4xf32>
    %16 = arith.mulf %11, %15 : vector<4x8x4xf32>
    %17 = arith.addf %9, %16 : vector<4x8x4xf32>
    %18 = vector.extract_strided_slice %1 {offsets = [2, 0, 0, 0], sizes = [1, 4, 8, 4], strides = [1, 1, 1, 1]} : vector<4x4x8x4xf32> to vector<1x4x8x4xf32>
    %19 = vector.shape_cast %18 : vector<1x4x8x4xf32> to vector<4x8x4xf32>
    %20 = vector.extract_strided_slice %2 {offsets = [2, 0], sizes = [1, 4], strides = [1, 1]} : vector<4x4xf32> to vector<1x4xf32>
    %21 = vector.shape_cast %20 : vector<1x4xf32> to vector<4xf32>
    %22 = vector.shape_cast %21 : vector<4xf32> to vector<1x1x4xf32>
    %23 = vector.broadcast %22 : vector<1x1x4xf32> to vector<4x8x4xf32>
    %24 = arith.mulf %19, %23 : vector<4x8x4xf32>
    %25 = arith.addf %17, %24 : vector<4x8x4xf32>
    %26 = vector.extract_strided_slice %1 {offsets = [3, 0, 0, 0], sizes = [1, 4, 8, 4], strides = [1, 1, 1, 1]} : vector<4x4x8x4xf32> to vector<1x4x8x4xf32>
    %27 = vector.shape_cast %26 : vector<1x4x8x4xf32> to vector<4x8x4xf32>
    %28 = vector.extract_strided_slice %2 {offsets = [3, 0], sizes = [1, 4], strides = [1, 1]} : vector<4x4xf32> to vector<1x4xf32>
    %29 = vector.shape_cast %28 : vector<1x4xf32> to vector<4xf32>
    %30 = vector.shape_cast %29 : vector<4xf32> to vector<1x1x4xf32>
    %31 = vector.broadcast %30 : vector<1x1x4xf32> to vector<4x8x4xf32>
    %32 = arith.mulf %27, %31 : vector<4x8x4xf32>
    %33 = arith.addf %25, %32 : vector<4x8x4xf32>
    %c0_6 = arith.constant 0 : index
    %c0_7 = arith.constant 0 : index
    %34 = vector.load %arg4[%c0_6, %c0_7] : memref<1x4xf32, #tpu.memory_space<vmem>>, vector<1x4xf32>
    %35 = vector.shape_cast %34 : vector<1x4xf32> to vector<4xf32>
    %36 = vector.shape_cast %35 : vector<4xf32> to vector<1x1x4xf32>
    %37 = vector.broadcast %36 : vector<1x1x4xf32> to vector<4x8x4xf32>
    %38 = arith.mulf %33, %37 : vector<4x8x4xf32>
    %c0_8 = arith.constant 0 : index
    %c0_9 = arith.constant 0 : index
    %39 = vector.load %arg5[%c0_8, %c0_9] : memref<1x4xf32, #tpu.memory_space<vmem>>, vector<1x4xf32>
    %40 = vector.shape_cast %39 : vector<1x4xf32> to vector<4xf32>
    %41 = vector.shape_cast %40 : vector<4xf32> to vector<1x1x4xf32>
    %42 = vector.broadcast %41 : vector<1x1x4xf32> to vector<4x8x4xf32>
    %43 = arith.addf %38, %42 : vector<4x8x4xf32>
    %cst = arith.constant 3.000000e+00 : f32
    %44 = vector.broadcast %cst : f32 to vector<4x8x4xf32>
    %45 = arith.addf %43, %44 : vector<4x8x4xf32>
    %cst_10 = arith.constant 0.000000e+00 : f32
    %cst_11 = arith.constant 6.000000e+00 : f32
    %46 = vector.broadcast %cst_10 : f32 to vector<4x8x4xf32>
    %47 = arith.maximumf %46, %45 : vector<4x8x4xf32>
    %48 = vector.broadcast %cst_11 : f32 to vector<4x8x4xf32>
    %49 = arith.minimumf %48, %47 : vector<4x8x4xf32>
    %50 = arith.mulf %43, %49 : vector<4x8x4xf32>
    %cst_12 = arith.constant 0.166666672 : f32
    %51 = vector.broadcast %cst_12 : f32 to vector<4x8x4xf32>
    %52 = arith.mulf %50, %51 : vector<4x8x4xf32>
    %c0_13 = arith.constant 0 : index
    %c0_14 = arith.constant 0 : index
    %c0_15 = arith.constant 0 : index
    %c0_16 = arith.constant 0 : index
    %53 = vector.load %arg6[%c0_13, %c0_14, %c0_15, %c0_16] : memref<1x4x8x4xf32, #tpu.memory_space<vmem>>, vector<1x4x8x4xf32>
    %54 = vector.shape_cast %53 : vector<1x4x8x4xf32> to vector<4x8x4xf32>
    %55 = vector.shape_cast %52 : vector<4x8x4xf32> to vector<1x4x8x4xf32>
    tpu.vector_store %arg6[%c0_13, %c0_14, %c0_15, %c0_16], %55 {strides = array<i32>} : memref<1x4x8x4xf32, #tpu.memory_space<vmem>>, vector<1x4x8x4xf32>,
    return
  }
  func.func @transform_0(%arg0: i32, %arg1: i32) -> (i32, i32, i32, i32, i32) {
    %c0_i32 = arith.constant 0 : i32
    %c0_i32_0 = arith.constant 0 : i32
    %c0_i32_1 = arith.constant 0 : i32
    %c0_i32_2 = arith.constant 0 : i32
    return %arg0, %c0_i32, %arg1, %c0_i32_0, %c0_i32_1 : i32, i32, i32, i32, i32
  }
  func.func @transform_1(%arg0: i32, %arg1: i32) -> (i32, i32) {
    %c0_i32 = arith.constant 0 : i32
    %c0_i32_0 = arith.constant 0 : i32
    %c0_i32_1 = arith.constant 0 : i32
    return %c0_i32, %c0_i32_0 : i32, i32
  }
  func.func @transform_2(%arg0: i32, %arg1: i32) -> (i32, i32) {
    %c0_i32 = arith.constant 0 : i32
    %c0_i32_0 = arith.constant 0 : i32
    %c0_i32_1 = arith.constant 0 : i32
    return %c0_i32, %c0_i32_0 : i32, i32
  }
  func.func @transform_3(%arg0: i32, %arg1: i32) -> (i32, i32) {
    %c0_i32 = arith.constant 0 : i32
    %c0_i32_0 = arith.constant 0 : i32
    %c0_i32_1 = arith.constant 0 : i32
    return %c0_i32, %c0_i32_0 : i32, i32
  }
  func.func @transform_4(%arg0: i32, %arg1: i32) -> (i32, i32, i32, i32) {
    %c0_i32 = arith.constant 0 : i32
    %c0_i32_0 = arith.constant 0 : i32
    %c0_i32_1 = arith.constant 0 : i32
    return %arg0, %arg1, %c0_i32, %c0_i32_0 : i32, i32, i32, i32
  }
}

</mosaic_0001>

<bundles_post_ra>
// kernel: tpu_custom_call.1
= control target key start
LH: loop header
LB: loop body
LE: loop exit
PB: predicated region body
PF: predicated region fallthrough
CT: control target
= control target key end

     0   :  { %s659_s15 = smov 0   ;;  %s661_s16 = smov 0   ;;  %s806_s0 = inlined_call_operand.vmem [shape: f32[2,4,8,8,4], index: 0, kind: input, shape index: {}]   ;;  %s807_s1 = inlined_call_operand.vmem [shape: f32[4,4], index: 1, kind: input, shape index: {}]   ;;  %s808_s2 = inlined_call_operand.vmem [shape: f32[1,4], index: 2, kind: input, shape index: {}]   ;;  %s809_s3 = inlined_call_operand.vmem [shape: f32[1,4], index: 3, kind: input, shape index: {}]   ;;  %s810_s4 = inlined_call_operand.vmem [shape: f32[2,8,8,4], index: 4, kind: output, shape index: {}]  }
   0x1   :  { %s663_s17 = smov 0   ;;  %s665_s18 = smov 0  }
   0x2   :  { %s667_s19 = smov 0   ;;  %s669_s20 = smov 0  }
   0x3   :  { %s671_s21 = smov 0  }
   0x4 LB: > { %s23_s22 = sadd.s32 1, %s624_s19  ;;  %s26_s23 = sadd.s32 1, %s628_s20  ;;  %s632_s21 = sphi %s671_s21, %s14_s21   ;;  %s628_s20 = sphi %s669_s20, %s817_s20   ;;  %s624_s19 = sphi %s667_s19, %s816_s19   ;;  %s620_s18 = sphi %s665_s18, %s815_s18   ;;  %s616_s17 = sphi %s663_s17, %s814_s17   ;;  %s612_s16 = sphi %s661_s16, %s813_s16   ;;  %s608_s15 = sphi %s659_s15, %s812_s15  }
   0x5   : > { %p24_p0 = scmp.ge.s32.totalorder %s23_s22, 2  ;;  %p42_p1 = scmp.ne.s32.totalorder %s612_s16, %s608_s15 }
   0x6   : > { %p43_p2 = scmp.eq.s32.totalorder %s632_s21, 0  ;;  %s35_s27 = sadd.s32 1, %s612_s16 }
   0x7   : > { %s819_s22 = smov (%p24_p0, %s23_s22), 0  ;;  %s821_s23 = smov (!%p24_p0, %s26_s23), %s628_s20 }
   0x8   : > { %p44_p3 = por %p43_p2, %p42_p1  ;;  %p28_p4 = scmp.ge.s32.totalorder %s821_s23, 2 }
   0x9   : > { %s31_s24 = ssub.s32 %s624_s19, %s819_s22  ;;  %p508_p6 = scmp.ge.s32.totalorder %s632_s21, 4 }
   0xa   : > { %s823_s23 = smov (%p28_p4, %s821_s23), 0 }
   0xb   : > { %s30_s25 = ssub.s32 %s628_s20, %s823_s23  ;;  %168 = sbr.rel (%p508_p6) target bundleno = 39 (0x27), region = 28 }
   0xc   : > { %s32_s26 = sor.u32 %s31_s24, %s30_s25 }
   0xd   : > { %p33_p5 = scmp.eq.s32.totalorder %s32_s26, 0 }
   0xf   : > { %s710_s28 = scalar_select %p33_p5, %s612_s16, %s35_s27  }
  0x10   : > { %171 = sbr.rel (!%p44_p3) target bundleno = 39 (0x27), region = 32  ;;  %s173_s29 = sand.u32 (%p44_p3), 1, %s612_s16  }
  0x11   : > { %s510_s30 = sshll.u32 (%p44_p3), %s624_s19, 2  ;;  %s509_s5 = sshll.u32 (%p44_p3), %s173_s29, 7 }
  0x12   : > { %s511_s6 = sshll.u32 (%p44_p3), %s628_s20, 5  ;;  %s175_s12 = scalar_lea.vmem (%p44_p3), [#allocation2], %s509_s5 }
  0x13   : > { %s178_s7 = sadd.s32 (%p44_p3), %s511_s6, %s510_s30 }
  0x14   : > { %s512_s8 = sshll.u32 (%p44_p3), %s178_s7, 3 }
  0x15   : > { %s719_s11 = scalar_lea.vmem %s806_s0, %s512_s8 }
  0x16   : > { %v239_v0 = vld [vmem:[%s719_s11] sm:$0xff]  ;;  %v241_v1 = vld [vmem:[%s719_s11 + $0x8] sm:$0xff]  ;;  %v243_v2 = vld [vmem:[%s719_s11 + $0x10] sm:$0xff] }
  0x17   : > { %240 = vst [vmem:[%s175_s12] sm:$0xff] %v239_v0  ;;  %v245_v3 = vld [vmem:[%s719_s11 + $0x18] sm:$0xff]  ;;  %v247_v4 = vld [vmem:[%s719_s11 + $0x40] sm:$0xff]  ;;  %v249_v5 = vld [vmem:[%s719_s11 + $0x48] sm:$0xff] }
  0x18   : > { %242 = vst [vmem:[%s175_s12 + $0x8] sm:$0xff] %v241_v1  ;;  %v251_v6 = vld [vmem:[%s719_s11 + $0x50] sm:$0xff]  ;;  %v253_v7 = vld [vmem:[%s719_s11 + $0x58] sm:$0xff]  ;;  %v255_v8 = vld [vmem:[%s719_s11 + $0x80] sm:$0xff] }
  0x19   : > { %244 = vst [vmem:[%s175_s12 + $0x10] sm:$0xff] %v243_v2  ;;  %v257_v9 = vld [vmem:[%s719_s11 + $0x88] sm:$0xff]  ;;  %v259_v10 = vld [vmem:[%s719_s11 + $0x90] sm:$0xff]  ;;  %v261_v11 = vld [vmem:[%s719_s11 + $0x98] sm:$0xff] }
  0x1a   : > { %246 = vst [vmem:[%s175_s12 + $0x18] sm:$0xff] %v245_v3  ;;  %v263_v12 = vld [vmem:[%s719_s11 + $0xc0] sm:$0xff]  ;;  %v265_v13 = vld [vmem:[%s719_s11 + $0xc8] sm:$0xff]  ;;  %v267_v14 = vld [vmem:[%s719_s11 + $0xd0] sm:$0xff] }
  0x1b   : > { %248 = vst [vmem:[%s175_s12 + $0x20] sm:$0xff] %v247_v4  ;;  %v269_v15 = vld [vmem:[%s719_s11 + $0xd8] sm:$0xff] }
  0x1c   : > { %250 = vst [vmem:[%s175_s12 + $0x28] sm:$0xff] %v249_v5 }
  0x1d   : > { %252 = vst [vmem:[%s175_s12 + $0x30] sm:$0xff] %v251_v6 }
  0x1e   : > { %254 = vst [vmem:[%s175_s12 + $0x38] sm:$0xff] %v253_v7 }
  0x1f   : > { %256 = vst [vmem:[%s175_s12 + $0x40] sm:$0xff] %v255_v8 }
  0x20   : > { %258 = vst [vmem:[%s175_s12 + $0x48] sm:$0xff] %v257_v9 }
  0x21   : > { %260 = vst [vmem:[%s175_s12 + $0x50] sm:$0xff] %v259_v10 }
  0x22   : > { %262 = vst [vmem:[%s175_s12 + $0x58] sm:$0xff] %v261_v11 }
  0x23   : > { %264 = vst [vmem:[%s175_s12 + $0x60] sm:$0xff] %v263_v12 }
  0x24   : > { %266 = vst [vmem:[%s175_s12 + $0x68] sm:$0xff] %v265_v13 }
  0x25   : > { %268 = vst [vmem:[%s175_s12 + $0x70] sm:$0xff] %v267_v14 }
  0x26   : > { %270 = vst [vmem:[%s175_s12 + $0x78] sm:$0xff] %v269_v15 }
  0x27 PF: > { %p513_p7 = scmp.ge.s32.totalorder %s632_s21, 1  ;;  %p275_p8 = scmp.lt.s32.totalorder %s632_s21, 5 }
  0x29   : > { %p276_p9 = pnand %p513_p7, %p275_p8 }
  0x2a   : > { %s282_s13 = sand.u32 (!%p276_p9), 1, %s608_s15   ;;  %s515_s15 = sshll.u32 (!%p276_p9), %s616_s17, 2 }
  0x2b   : > { %279 = sbr.rel (%p276_p9) target bundleno = 78 (0x4e), region = 70  ;;  %s514_s25 = sshll.u32 (!%p276_p9), %s282_s13, 7 }
  0x2c   : > { %s743_s26 = scalar_lea.vmem (!%p276_p9), [#allocation2], %s514_s25  ;;  %p313_p10 = scmp.lt.s32.totalorder (!%p276_p9), %s620_s18, 1 }
  0x2d   : > { %p768_p11 = scmp.lt.s32.totalorder (!%p276_p9), %s515_s15, 7 }
  0x30   : > { %v338_v16 = vld [vmem:[%s807_s1] sm:$0xf]  ;;  %v323_v28 = vld [vmem:[%s743_s26 + $0x8] sm:$0xff]  ;;  %v324_v37 = vld [vmem:[%s743_s26 + $0x10] sm:$0xff]  ;;  %s825_s18 = smov (!%p313_p10, %s620_s18), 1  ;;  %s827_s15 = smov (!%p768_p11, %s515_s15), 7 }
  0x31   : > { %v339_v17 = vperm.slane %v338_v16, 0  ;;  %v344_v18 = vperm.slane %v338_v16, 1  ;;  %v353_v19 = vperm.slane %v338_v16, 2  ;;  %v362_v20 = vperm.slane %v338_v16, 3  ;;  %v322_v21 = vld [vmem:[%s743_s26] sm:$0xff]  ;;  %v327_v29 = vld [vmem:[%s743_s26 + $0x28] sm:$0xff] }
  0x32   : > { %v326_v22 = vld [vmem:[%s743_s26 + $0x20] sm:$0xff]  ;;  %v331_v30 = vld [vmem:[%s743_s26 + $0x48] sm:$0xff]  ;;  %v328_v38 = vld [vmem:[%s743_s26 + $0x30] sm:$0xff]  ;;  %s516_s7 = sshll.u32 %s825_s18, 3  ;;  %vm407_vm0 = vcmask 31744  }
  0x33   : > { %v330_v23 = vld [vmem:[%s743_s26 + $0x40] sm:$0xff]  ;;  %v340_v25 = vmul.f32 %v339_v17, %v322_v21  ;;  %v345_v26 = vmul.f32 %v344_v18, %v326_v22  ;;  %v335_v31 = vld [vmem:[%s743_s26 + $0x68] sm:$0xff]  ;;  %v341_v32 = vmul.f32 %v339_v17, %v323_v28  ;;  %v346_v35 = vmul.f32 %v344_v18, %v327_v29  ;;  %v332_v39 = vld [vmem:[%s743_s26 + $0x50] sm:$0xff]  ;;  %s318_s8 = sadd.s32 %s516_s7, %s827_s15 }
  0x34   : > { %v334_v24 = vld [vmem:[%s743_s26 + $0x60] sm:$0xff]  ;;  %v354_v27 = vmul.f32 %v353_v19, %v330_v23  ;;  %v355_v36 = vmul.f32 %v353_v19, %v331_v30  ;;  %v336_v40 = vld [vmem:[%s743_s26 + $0x70] sm:$0xff]  ;;  %v342_v41 = vmul.f32 %v339_v17, %v324_v37  ;;  %v347_v42 = vmul.f32 %v344_v18, %v328_v38  ;;  %v325_v44 = vld [vmem:[%s743_s26 + $0x18] sm:$0xff]  ;;  %s517_s9 = sshll.u32 %s318_s8, 3 }
  0x35   : > { %v349_v33 = vadd.f32 %v345_v26, %v340_v25  ;;  %v363_v34 = vmul.f32 %v362_v20, %v334_v24  ;;  %v356_v43 = vmul.f32 %v353_v19, %v332_v39  ;;  %v329_v45 = vld [vmem:[%s743_s26 + $0x38] sm:$0xff]  ;;  %v576_v47 = vld [vmem:[%s808_s2] ss:$0 sm:$0xff]  ;;  %v350_v48 = vadd.f32 %v346_v35, %v341_v32  ;;  %s320_s10 = scalar_lea.vmem %s810_s4, %s517_s9 }
  0x36   : > { %v364_v49 = vmul.f32 %v362_v20, %v335_v31  ;;  %v333_v50 = vld [vmem:[%s743_s26 + $0x58] sm:$0xff]  ;;  %v343_v52 = vmul.f32 %v339_v17, %v325_v44  ;;  %v351_v53 = vadd.f32 %v347_v42, %v342_v41  ;;  %v365_v54 = vmul.f32 %v362_v20, %v336_v40  ;;  %v577_v58 = vld [vmem:[%s809_s3] ss:$0 sm:$0xff] }
  0x37   : > { %v358_v46 = vadd.f32 %v354_v27, %v349_v33  ;;  %v337_v51 = vld [vmem:[%s743_s26 + $0x78] sm:$0xff]  ;;  %v348_v55 = vmul.f32 %v344_v18, %v329_v45  ;;  %v357_v56 = vmul.f32 %v353_v19, %v333_v50  ;;  %v359_v59 = vadd.f32 %v355_v36, %v350_v48 }
  0x38   : > { %v360_v60 = vadd.f32 %v356_v43, %v351_v53  ;;  %v366_v62 = vmul.f32 %v362_v20, %v337_v51 }
  0x39   : > { %v367_v57 = vadd.f32 %v363_v34, %v358_v46  ;;  %v352_v61 = vadd.f32 %v348_v55, %v343_v52  ;;  %v368_v0 = vadd.f32 %v364_v49, %v359_v59 }
  0x3a   : > { %v369_v1 = vadd.f32 %v365_v54, %v360_v60 }
  0x3b   : > { %v375_v63 = vmul.f32 %v576_v47, %v367_v57  ;;  %v361_v2 = vadd.f32 %v357_v56, %v352_v61  ;;  %v376_v4 = vmul.f32 %v576_v47, %v368_v0 }
  0x3c   : > { %v377_v5 = vmul.f32 %v576_v47, %v369_v1 }
  0x3d   : > { %v383_v3 = vadd.f32 %v577_v58, %v375_v63  ;;  %v370_v6 = vadd.f32 %v366_v62, %v361_v2  ;;  %v384_v8 = vadd.f32 %v577_v58, %v376_v4 }
  0x3e   : > { %v385_v9 = vadd.f32 %v577_v58, %v377_v5 }
  0x3f   : > { %v387_v7 = vadd.f32 3.0, %v383_v3  ;;  %v378_v10 = vmul.f32 %v576_v47, %v370_v6  ;;  %v388_v12 = vadd.f32 3.0, %v384_v8 }
  0x40   : > { %v389_v13 = vadd.f32 3.0, %v385_v9 }
  0x41   : > { %v391_v11 = vmax.f32 %v387_v7, 0.0  ;;  %v386_v14 = vadd.f32 %v577_v58, %v378_v10  ;;  %v392_v16 = vmax.f32 %v388_v12, 0.0 }
  0x42   : > { %v393_v17 = vmax.f32 %v389_v13, 0.0 }
  0x43   : > { %v395_v15 = vmin.f32 %v391_v11, 6.0  ;;  %v390_v18 = vadd.f32 3.0, %v386_v14  ;;  %v396_v20 = vmin.f32 %v392_v16, 6.0 }
  0x44   : > { %v397_v21 = vmin.f32 %v393_v17, 6.0 }
  0x45   : > { %v399_v19 = vmul.f32 %v395_v15, %v383_v3  ;;  %v394_v22 = vmax.f32 %v390_v18, 0.0  ;;  %v400_v24 = vmul.f32 %v396_v20, %v384_v8 }
  0x46   : > { %v401_v25 = vmul.f32 %v397_v21, %v385_v9 }
  0x47   : > { %v403_v23 = vmul.f32 0.16666667, %v399_v19  ;;  %v398_v26 = vmin.f32 %v394_v22, 6.0  ;;  %v404_v27 = vmul.f32 0.16666667, %v400_v24 }
  0x48   : > { %v405_v28 = vmul.f32 0.16666667, %v401_v25 }
  0x49   : > { %408 = vst.msk [vmem:[%s320_s10] sm:$0xff] %vm407_vm0, %v403_v23  ;;  %v402_v29 = vmul.f32 %v398_v26, %v386_v14 }
  0x4a   : > { %409 = vst.msk [vmem:[%s320_s10 + $0x8] sm:$0xff] %vm407_vm0, %v404_v27 }
  0x4b   : > { %410 = vst.msk [vmem:[%s320_s10 + $0x10] sm:$0xff] %vm407_vm0, %v405_v28  ;;  %v406_v30 = vmul.f32 0.16666667, %v402_v29 }
  0x4d   : > { %411 = vst.msk [vmem:[%s320_s10 + $0x18] sm:$0xff] %vm407_vm0, %v406_v30 }
  0x4e PF: > { %s14_s21 = sadd.s32 1, %s632_s21   ;;  %s812_s15 = smov %s612_s16 }
  0x4f   : > { %p11_p12 = scmp.ge.s32.totalorder %s14_s21, 6   ;;  %s813_s16 = smov %s710_s28 }
  0x50   : > { %s814_s17 = smov %s624_s19  ;;  %s815_s18 = smov %s628_s20 }
  0x51   : > { %s816_s19 = smov %s819_s22  ;;  %s817_s20 = smov %s823_s23 }
  0x52   :  { %13 = sbr.rel (!%p11_p12) target bundleno = 4 (0x4), region = 109 }

</bundles_post_ra>
